<compile_context>
chip_gen: v5e
topology: v5e:2x2
jax: 0.10.0
libtpu: 0.0.40
codegen_flags: <defaults>
</compile_context>

<pallas_src>
import jax
import jax.numpy as jnp
from jax import lax
from jax.experimental import pallas as pl
from jax.experimental.pallas import tpu as pltpu

# Matmul input dtype.  float32 keeps the validation tolerance tight (1e-4 vs
# the f32 reference); set to jnp.bfloat16 for full-rate MXU on v5e/v6e/v7x
# (~1e-3 relative error, still fine for training).
_MM_DTYPE = jnp.float32


# ---------------------------------------------------------------------------
# Pass 1: fused conv + gate, plus per-tile BN partial statistics.
# ---------------------------------------------------------------------------
def _gated_conv_kernel(x_ref, t_ref, b_ref, y_ref, s_ref):
    """One (batch, row-tile) grid step.

    x_ref: (TH+2, (W+2)*Cin)        zero-padded input rows, width folded to lanes
    t_ref: (3, (W+2)*Cin, 2*W*Cout) fused Toeplitz weights [conv half | mask half]
    b_ref: (2, W*Cout)              row 0: conv bias tiled over W, row 1: mask bias
    y_ref: (TH, W*Cout)             gated activation (lane-dense)
    s_ref: (2, W*Cout)              per-tile partial [sum, sum-of-squares] of y
    """
    TH, WC = y_ref.shape
    acc = jnp.zeros((TH, 2 * WC), jnp.float32)
    # 3x3 conv folded over width: one MXU matmul per kernel row (kh).  The kh
    # slice is a cheap sublane-offset view; no per-tap reshape / relayout.
    for kh in range(3):
        acc = acc + jnp.dot(
            x_ref[kh:kh + TH, :].astype(_MM_DTYPE),
            t_ref[kh],
            preferred_element_type=jnp.float32,
        )
    bias = b_ref[...]
    x_lin = acc[:, :WC] + bias[0:1, :]          # conv half  (lane-dense)
    m_lin = acc[:, WC:] + bias[1:2, :]          # mask half  (lane-dense)
    act = jnp.where(x_lin >= 0.0, x_lin, 0.2 * x_lin)   # LeakyReLU(0.2)
    y = act * jax.nn.sigmoid(m_lin)                     # gated activation
    y_ref[...] = y
    s_ref[0:1, :] = jnp.sum(y, axis=0, keepdims=True)
    s_ref[1:2, :] = jnp.sum(y * y, axis=0, keepdims=True)


# ---------------------------------------------------------------------------
# Pass 2: apply the global BatchNorm scale/shift (lane-dense elementwise).
# ---------------------------------------------------------------------------
def _bn_apply_kernel(y_ref, scale_ref, shift_ref, o_ref):
    o_ref[...] = y_ref[...] * scale_ref[...] + shift_ref[...]


def _toeplitz_weights(w_oihw, W, dtype):
    """OIHW (Cout, Cin, 3, 3) -> (3, (W+2)*Cin, W*Cout).

    Row index is w_in*Cin + ci over the padded width, column index is
    w*Cout + co, so  out_row[h] = sum_kh  x_row[h+kh] @ T[kh].
    """
    Cout, Cin, KH, KW = w_oihw.shape
    taps = jnp.transpose(w_oihw, (2, 3, 1, 0))            # (kh, kw, ci, co)
    mats = []
    for kh in range(KH):
        w3 = taps[kh].reshape(KW * Cin, Cout)             # row = kw*Cin + ci
        cols = [jnp.pad(w3, ((w * Cin, (W - 1 - w) * Cin), (0, 0)))
                for w in range(W)]
        mats.append(jnp.concatenate(cols, axis=1))        # ((W+2)*Cin, W*Cout)
    return jnp.stack(mats, axis=0).astype(dtype)


@jax.jit
def mask_conv2d(x_nchw, w_conv_oihw, b_conv, w_mask_oihw, b_mask):
    """MaskConv2d forward.  x_nchw: (B, Cin, H, W) -> (B, Cout, H, W), float32."""
    B, Cin, H, W = x_nchw.shape
    Cout = w_conv_oihw.shape[0]
    WC = W * Cout                       # lane-dense last dim (128 in the demo)
    Kw = (W + 2) * Cin                  # folded contraction width per kh

    # Row tiling: TH output rows per grid step, 1-row halo on each side.
    # TODO(synk): for large images, size TH to the v7x 32 MiB scoped-VMEM
    # budget and avoid halo-row duplication via element-indexed BlockSpecs or
    # a manual-DMA halo; and for large Cin/Cout switch to a channel-major
    # im2col formulation instead of width folding.
    TH = 8 if H % 8 == 0 else H
    NR = H // TH

    # Wrapper-side layout (NCHW API kept to match PyTorch; the two transposes
    # vanish if callers can supply/consume NHWC directly).
    x_nhwc = jnp.transpose(x_nchw, (0, 2, 3, 1)).astype(jnp.float32)
    x_pad = jnp.pad(x_nhwc, ((0, 0), (1, 1), (1, 1), (0, 0)))
    x_rows = x_pad.reshape(B, H + 2, Kw)                       # width -> lanes
    x_tiles = jnp.stack(
        [x_rows[:, r * TH:r * TH + TH + 2, :] for r in range(NR)], axis=1
    ).astype(_MM_DTYPE)                                        # (B, NR, TH+2, Kw)

    # Fused conv|mask Toeplitz weights and width-tiled biases.
    t_w = jnp.concatenate(
        [_toeplitz_weights(w_conv_oihw, W, _MM_DTYPE),
         _toeplitz_weights(w_mask_oihw, W, _MM_DTYPE)], axis=2)  # (3, Kw, 2*WC)
    bias2 = jnp.stack([jnp.tile(b_conv.astype(jnp.float32), W),
                       jnp.tile(b_mask.astype(jnp.float32), W)])  # (2, WC)

    # ---- pass 1: fused conv + gate + partial BN stats ----
    y_tiles, stats = pl.pallas_call(
        _gated_conv_kernel,
        grid=(B, NR),
        in_specs=[
            pl.BlockSpec((None, None, TH + 2, Kw), lambda b, r: (b, r, 0, 0)),
            pl.BlockSpec((3, Kw, 2 * WC), lambda b, r: (0, 0, 0)),
            pl.BlockSpec((2, WC), lambda b, r: (0, 0)),
        ],
        out_specs=(
            pl.BlockSpec((None, None, TH, WC), lambda b, r: (b, r, 0, 0)),
            pl.BlockSpec((None, None, 2, WC), lambda b, r: (b, r, 0, 0)),
        ),
        out_shape=(
            jax.ShapeDtypeStruct((B, NR, TH, WC), jnp.float32),
            jax.ShapeDtypeStruct((B, NR, 2, WC), jnp.float32),
        ),
        compiler_params=pltpu.CompilerParams(
            dimension_semantics=("parallel", "parallel"),
            vmem_limit_bytes=8 * 1024 * 1024),
    )(x_tiles, t_w, bias2)

    # ---- tiny global BN reduction (per-channel mean / biased variance) ----
    s = jnp.sum(stats, axis=(0, 1)).reshape(2, W, Cout).sum(axis=1)  # (2, Cout)
    count = jnp.float32(B * H * W)
    mean = s[0] / count
    var = s[1] / count - mean * mean
    scale_c = lax.rsqrt(var + 1e-5)            # gamma = 1
    shift_c = -mean * scale_c                  # beta  = 0
    scale_vec = jnp.tile(scale_c, W).reshape(1, WC)
    shift_vec = jnp.tile(shift_c, W).reshape(1, WC)

    # ---- pass 2: lane-dense normalize ----
    out_tiles = pl.pallas_call(
        _bn_apply_kernel,
        grid=(B, NR),
        in_specs=[
            pl.BlockSpec((None, None, TH, WC), lambda b, r: (b, r, 0, 0)),
            pl.BlockSpec((1, WC), lambda b, r: (0, 0)),
            pl.BlockSpec((1, WC), lambda b, r: (0, 0)),
        ],
        out_specs=pl.BlockSpec((None, None, TH, WC), lambda b, r: (b, r, 0, 0)),
        out_shape=jax.ShapeDtypeStruct((B, NR, TH, WC), jnp.float32),
        compiler_params=pltpu.CompilerParams(
            dimension_semantics=("parallel", "parallel")),
    )(y_tiles, scale_vec, shift_vec)

    out_nhwc = out_tiles.reshape(B, H, W, Cout)
    return jnp.transpose(out_nhwc, (0, 3, 1, 2))          # back to NCHW


def _reference(x_nchw, w_conv, b_conv, w_mask, b_mask):
    """Pure-JAX reference (mirrors the PyTorch module) for validation."""
    dn = ("NCHW", "OIHW", "NCHW")
    conv = lambda x, w: lax.conv_general_dilated(
        x, w, window_strides=(1, 1), padding=((1, 1), (1, 1)),
        dimension_numbers=dn)
    x = conv(x_nchw, w_conv) + b_conv[None, :, None, None]
    m = conv(x_nchw, w_mask) + b_mask[None, :, None, None]
    y = jnp.where(x >= 0, x, 0.2 * x) * jax.nn.sigmoid(m)
    mean = jnp.mean(y, axis=(0, 2, 3), keepdims=True)
    var = jnp.mean((y - mean) ** 2, axis=(0, 2, 3), keepdims=True)
    return (y - mean) * lax.rsqrt(var + 1e-5)


if __name__ == "__main__":
    B, Cin, Cout, H, W = 2, 4, 8, 16, 16

    key = jax.random.PRNGKey(0)
    kx, kw1, kb1, kw2, kb2 = jax.random.split(key, 5)

    x = jax.random.normal(kx, (B, Cin, H, W), jnp.float32)

    # Deterministic parameter init (Kaiming-normal-like weights, uniform bias).
    fan_in = Cin * 3 * 3
    std = (2.0 / fan_in) ** 0.5
    bound = 1.0 / (fan_in ** 0.5)
    w_conv = std * jax.random.normal(kw1, (Cout, Cin, 3, 3), jnp.float32)
    b_conv = jax.random.uniform(kb1, (Cout,), jnp.float32, -bound, bound)
    w_mask = std * jax.random.normal(kw2, (Cout, Cin, 3, 3), jnp.float32)
    b_mask = jax.random.uniform(kb2, (Cout,), jnp.float32, -bound, bound)

    out = mask_conv2d(x, w_conv, b_conv, w_mask, b_mask)
    out = jax.block_until_ready(out)

    ref = _reference(x, w_conv, b_conv, w_mask, b_mask)
    assert out.shape == (B, Cout, H, W)
    assert jnp.allclose(out, ref, atol=2e-4, rtol=2e-4), "mismatch vs reference"

    print("KERNEL_OK")
</pallas_src>

<mosaic_0001>
module attributes {stable_mosaic.version = 11 : i64} {
  func.func @_gated_conv_kernel(%arg0: i32, %arg1: i32, %arg2: memref<1x1x10x72xf32, #tpu.memory_space<vmem>>, %arg3: memref<3x72x256xf32, #tpu.memory_space<vmem>>, %arg4: memref<2x128xf32, #tpu.memory_space<vmem>>, %arg5: memref<1x1x8x128xf32, #tpu.memory_space<vmem>>, %arg6: memref<1x1x2x128xf32, #tpu.memory_space<vmem>>) attributes {dimension_semantics = [#tpu.dimension_semantics<parallel>, #tpu.dimension_semantics<parallel>], iteration_bounds = array<i64: 2, 2>, scalar_prefetch = 0 : i64, scratch_operands = 0 : i64, tpu.core_type = #tpu.core_type<tc>, window_params = [{transform_indices = @transform_0, window_bounds = array<i64: 1, 1, 10, 72>}, {pipeline_mode = #tpu.pipeline_mode<synchronous>, transform_indices = @transform_1, window_bounds = array<i64: 3, 72, 256>}, {pipeline_mode = #tpu.pipeline_mode<synchronous>, transform_indices = @transform_2, window_bounds = array<i64: 2, 128>}, {transform_indices = @transform_3, window_bounds = array<i64: 1, 1, 8, 128>}, {transform_indices = @transform_4, window_bounds = array<i64: 1, 1, 2, 128>}]} {
    %cst = arith.constant 0.000000e+00 : f32
    %0 = vector.broadcast %cst : f32 to vector<8x256xf32>
    %c0 = arith.constant 0 : index
    %c0_0 = arith.constant 0 : index
    %c0_1 = arith.constant 0 : index
    %c0_2 = arith.constant 0 : index
    %1 = vector.load %arg2[%c0, %c0_0, %c0_1, %c0_2] : memref<1x1x10x72xf32, #tpu.memory_space<vmem>>, vector<1x1x8x72xf32>
    %2 = vector.shape_cast %1 : vector<1x1x8x72xf32> to vector<8x72xf32>
    %c0_3 = arith.constant 0 : index
    %c0_4 = arith.constant 0 : index
    %c0_5 = arith.constant 0 : index
    %3 = vector.load %arg3[%c0_3, %c0_4, %c0_5] : memref<3x72x256xf32, #tpu.memory_space<vmem>>, vector<1x72x256xf32>
    %4 = vector.shape_cast %3 : vector<1x72x256xf32> to vector<72x256xf32>
    %cst_6 = arith.constant dense<0.000000e+00> : vector<8x256xf32>
    %5 = tpu.matmul %2, %4, %cst_6 {dimension_numbers = #tpu.dot_dimension_numbers<[1], [0], [0], [1], [0, 0, 1, 1], [], []>} : vector<8x72xf32>, vector<72x256xf32>, vector<8x256xf32> -> vector<8x256xf32>
    %6 = arith.addf %0, %5 : vector<8x256xf32>
    %c0_7 = arith.constant 0 : index
    %c0_8 = arith.constant 0 : index
    %c1 = arith.constant 1 : index
    %c0_9 = arith.constant 0 : index
    %7 = vector.load %arg2[%c0_7, %c0_8, %c1, %c0_9] : memref<1x1x10x72xf32, #tpu.memory_space<vmem>>, vector<1x1x8x72xf32>
    %8 = vector.shape_cast %7 : vector<1x1x8x72xf32> to vector<8x72xf32>
    %c1_10 = arith.constant 1 : index
    %c0_11 = arith.constant 0 : index
    %c0_12 = arith.constant 0 : index
    %9 = vector.load %arg3[%c1_10, %c0_11, %c0_12] : memref<3x72x256xf32, #tpu.memory_space<vmem>>, vector<1x72x256xf32>
    %10 = vector.shape_cast %9 : vector<1x72x256xf32> to vector<72x256xf32>
    %cst_13 = arith.constant dense<0.000000e+00> : vector<8x256xf32>
    %11 = tpu.matmul %8, %10, %cst_13 {dimension_numbers = #tpu.dot_dimension_numbers<[1], [0], [0], [1], [0, 0, 1, 1], [], []>} : vector<8x72xf32>, vector<72x256xf32>, vector<8x256xf32> -> vector<8x256xf32>
    %12 = arith.addf %6, %11 : vector<8x256xf32>
    %c0_14 = arith.constant 0 : index
    %c0_15 = arith.constant 0 : index
    %c2 = arith.constant 2 : index
    %c0_16 = arith.constant 0 : index
    %13 = vector.load %arg2[%c0_14, %c0_15, %c2, %c0_16] : memref<1x1x10x72xf32, #tpu.memory_space<vmem>>, vector<1x1x8x72xf32>
    %14 = vector.shape_cast %13 : vector<1x1x8x72xf32> to vector<8x72xf32>
    %c2_17 = arith.constant 2 : index
    %c0_18 = arith.constant 0 : index
    %c0_19 = arith.constant 0 : index
    %15 = vector.load %arg3[%c2_17, %c0_18, %c0_19] : memref<3x72x256xf32, #tpu.memory_space<vmem>>, vector<1x72x256xf32>
    %16 = vector.shape_cast %15 : vector<1x72x256xf32> to vector<72x256xf32>
    %cst_20 = arith.constant dense<0.000000e+00> : vector<8x256xf32>
    %17 = tpu.matmul %14, %16, %cst_20 {dimension_numbers = #tpu.dot_dimension_numbers<[1], [0], [0], [1], [0, 0, 1, 1], [], []>} : vector<8x72xf32>, vector<72x256xf32>, vector<8x256xf32> -> vector<8x256xf32>
    %18 = arith.addf %12, %17 : vector<8x256xf32>
    %c0_21 = arith.constant 0 : index
    %c0_22 = arith.constant 0 : index
    %19 = vector.load %arg4[%c0_21, %c0_22] : memref<2x128xf32, #tpu.memory_space<vmem>>, vector<2x128xf32>
    %20 = vector.extract_strided_slice %18 {offsets = [0, 0], sizes = [8, 128], strides = [1, 1]} : vector<8x256xf32> to vector<8x128xf32>
    %21 = vector.extract_strided_slice %19 {offsets = [0, 0], sizes = [1, 128], strides = [1, 1]} : vector<2x128xf32> to vector<1x128xf32>
    %22 = vector.broadcast %21 : vector<1x128xf32> to vector<8x128xf32>
    %23 = arith.addf %20, %22 : vector<8x128xf32>
    %24 = vector.extract_strided_slice %18 {offsets = [0, 128], sizes = [8, 128], strides = [1, 1]} : vector<8x256xf32> to vector<8x128xf32>
    %25 = vector.extract_strided_slice %19 {offsets = [1, 0], sizes = [1, 128], strides = [1, 1]} : vector<2x128xf32> to vector<1x128xf32>
    %26 = vector.broadcast %25 : vector<1x128xf32> to vector<8x128xf32>
    %27 = arith.addf %24, %26 : vector<8x128xf32>
    %cst_23 = arith.constant 0.000000e+00 : f32
    %28 = vector.broadcast %cst_23 : f32 to vector<8x128xf32>
    %29 = arith.cmpf oge, %23, %28 : vector<8x128xf32>
    %cst_24 = arith.constant 2.000000e-01 : f32
    %30 = vector.broadcast %cst_24 : f32 to vector<8x128xf32>
    %31 = arith.mulf %30, %23 : vector<8x128xf32>
    %32 = arith.select %29, %23, %31 : vector<8x128xi1>, vector<8x128xf32>
    %33 = arith.negf %27 : vector<8x128xf32>
    %34 = math.exp %33 : vector<8x128xf32>
    %cst_25 = arith.constant 1.000000e+00 : f32
    %35 = vector.broadcast %cst_25 : f32 to vector<8x128xf32>
    %36 = arith.addf %35, %34 : vector<8x128xf32>
    %37 = arith.divf %35, %36 : vector<8x128xf32>
    %38 = arith.mulf %32, %37 : vector<8x128xf32>
    %c0_26 = arith.constant 0 : index
    %c0_27 = arith.constant 0 : index
    %c0_28 = arith.constant 0 : index
    %c0_29 = arith.constant 0 : index
    %39 = vector.load %arg5[%c0_26, %c0_27, %c0_28, %c0_29] : memref<1x1x8x128xf32, #tpu.memory_space<vmem>>, vector<1x1x8x128xf32>
    %40 = vector.shape_cast %39 : vector<1x1x8x128xf32> to vector<8x128xf32>
    %41 = vector.shape_cast %38 : vector<8x128xf32> to vector<1x1x8x128xf32>
    tpu.vector_store %arg5[%c0_26, %c0_27, %c0_28, %c0_29], %41 {strides = array<i32>} : memref<1x1x8x128xf32, #tpu.memory_space<vmem>>, vector<1x1x8x128xf32>,
    %cst_30 = arith.constant dense<0.000000e+00> : vector<128xf32>
    %42 = vector.multi_reduction <add>, %38, %cst_30 [0] : vector<8x128xf32> to vector<128xf32>
    %43 = vector.shape_cast %42 : vector<128xf32> to vector<1x128xf32>
    %c0_31 = arith.constant 0 : index
    %c0_32 = arith.constant 0 : index
    %c0_33 = arith.constant 0 : index
    %c0_34 = arith.constant 0 : index
    %44 = vector.load %arg6[%c0_31, %c0_32, %c0_33, %c0_34] : memref<1x1x2x128xf32, #tpu.memory_space<vmem>>, vector<1x1x1x128xf32>
    %45 = vector.shape_cast %44 : vector<1x1x1x128xf32> to vector<1x128xf32>
    %46 = vector.shape_cast %43 : vector<1x128xf32> to vector<1x1x1x128xf32>
    tpu.vector_store %arg6[%c0_31, %c0_32, %c0_33, %c0_34], %46 {strides = array<i32>} : memref<1x1x2x128xf32, #tpu.memory_space<vmem>>, vector<1x1x1x128xf32>,
    %47 = arith.mulf %38, %38 : vector<8x128xf32>
    %cst_35 = arith.constant dense<0.000000e+00> : vector<128xf32>
    %48 = vector.multi_reduction <add>, %47, %cst_35 [0] : vector<8x128xf32> to vector<128xf32>
    %49 = vector.shape_cast %48 : vector<128xf32> to vector<1x128xf32>
    %c0_36 = arith.constant 0 : index
    %c0_37 = arith.constant 0 : index
    %c1_38 = arith.constant 1 : index
    %c0_39 = arith.constant 0 : index
    %50 = vector.load %arg6[%c0_36, %c0_37, %c1_38, %c0_39] : memref<1x1x2x128xf32, #tpu.memory_space<vmem>>, vector<1x1x1x128xf32>
    %51 = vector.shape_cast %50 : vector<1x1x1x128xf32> to vector<1x128xf32>
    %52 = vector.shape_cast %49 : vector<1x128xf32> to vector<1x1x1x128xf32>
    tpu.vector_store %arg6[%c0_36, %c0_37, %c1_38, %c0_39], %52 {strides = array<i32>} : memref<1x1x2x128xf32, #tpu.memory_space<vmem>>, vector<1x1x1x128xf32>,
    return
  }
  func.func @transform_0(%arg0: i32, %arg1: i32) -> (i32, i32, i32, i32) {
    %c0_i32 = arith.constant 0 : i32
    %c0_i32_0 = arith.constant 0 : i32
    %c0_i32_1 = arith.constant 0 : i32
    return %arg0, %arg1, %c0_i32, %c0_i32_0 : i32, i32, i32, i32
  }
  func.func @transform_1(%arg0: i32, %arg1: i32) -> (i32, i32, i32) {
    %c0_i32 = arith.constant 0 : i32
    %c0_i32_0 = arith.constant 0 : i32
    %c0_i32_1 = arith.constant 0 : i32
    %c0_i32_2 = arith.constant 0 : i32
    return %c0_i32, %c0_i32_0, %c0_i32_1 : i32, i32, i32
  }
  func.func @transform_2(%arg0: i32, %arg1: i32) -> (i32, i32) {
    %c0_i32 = arith.constant 0 : i32
    %c0_i32_0 = arith.constant 0 : i32
    %c0_i32_1 = arith.constant 0 : i32
    return %c0_i32, %c0_i32_0 : i32, i32
  }
  func.func @transform_3(%arg0: i32, %arg1: i32) -> (i32, i32, i32, i32) {
    %c0_i32 = arith.constant 0 : i32
    %c0_i32_0 = arith.constant 0 : i32
    %c0_i32_1 = arith.constant 0 : i32
    return %arg0, %arg1, %c0_i32, %c0_i32_0 : i32, i32, i32, i32
  }
  func.func @transform_4(%arg0: i32, %arg1: i32) -> (i32, i32, i32, i32) {
    %c0_i32 = arith.constant 0 : i32
    %c0_i32_0 = arith.constant 0 : i32
    %c0_i32_1 = arith.constant 0 : i32
    return %arg0, %arg1, %c0_i32, %c0_i32_0 : i32, i32, i32, i32
  }
}

module attributes {stable_mosaic.version = 11 : i64} {
  func.func @_bn_apply_kernel(%arg0: i32, %arg1: i32, %arg2: memref<1x1x8x128xf32, #tpu.memory_space<vmem>>, %arg3: memref<1x128xf32, #tpu.memory_space<vmem>>, %arg4: memref<1x128xf32, #tpu.memory_space<vmem>>, %arg5: memref<1x1x8x128xf32, #tpu.memory_space<vmem>>) attributes {dimension_semantics = [#tpu.dimension_semantics<parallel>, #tpu.dimension_semantics<parallel>], iteration_bounds = array<i64: 2, 2>, scalar_prefetch = 0 : i64, scratch_operands = 0 : i64, tpu.core_type = #tpu.core_type<tc>, window_params = [{transform_indices = @transform_0, window_bounds = array<i64: 1, 1, 8, 128>}, {pipeline_mode = #tpu.pipeline_mode<synchronous>, transform_indices = @transform_1, window_bounds = array<i64: 1, 128>}, {pipeline_mode = #tpu.pipeline_mode<synchronous>, transform_indices = @transform_2, window_bounds = array<i64: 1, 128>}, {transform_indices = @transform_3, window_bounds = array<i64: 1, 1, 8, 128>}]} {
    %c0 = arith.constant 0 : index
    %c0_0 = arith.constant 0 : index
    %c0_1 = arith.constant 0 : index
    %c0_2 = arith.constant 0 : index
    %0 = vector.load %arg2[%c0, %c0_0, %c0_1, %c0_2] : memref<1x1x8x128xf32, #tpu.memory_space<vmem>>, vector<1x1x8x128xf32>
    %1 = vector.shape_cast %0 : vector<1x1x8x128xf32> to vector<8x128xf32>
    %c0_3 = arith.constant 0 : index
    %c0_4 = arith.constant 0 : index
    %2 = vector.load %arg3[%c0_3, %c0_4] : memref<1x128xf32, #tpu.memory_space<vmem>>, vector<1x128xf32>
    %3 = vector.broadcast %2 : vector<1x128xf32> to vector<8x128xf32>
    %4 = arith.mulf %1, %3 : vector<8x128xf32>
    %c0_5 = arith.constant 0 : index
    %c0_6 = arith.constant 0 : index
    %5 = vector.load %arg4[%c0_5, %c0_6] : memref<1x128xf32, #tpu.memory_space<vmem>>, vector<1x128xf32>
    %6 = vector.broadcast %5 : vector<1x128xf32> to vector<8x128xf32>
    %7 = arith.addf %4, %6 : vector<8x128xf32>
    %c0_7 = arith.constant 0 : index
    %c0_8 = arith.constant 0 : index
    %c0_9 = arith.constant 0 : index
    %c0_10 = arith.constant 0 : index
    %8 = vector.load %arg5[%c0_7, %c0_8, %c0_9, %c0_10] : memref<1x1x8x128xf32, #tpu.memory_space<vmem>>, vector<1x1x8x128xf32>
    %9 = vector.shape_cast %8 : vector<1x1x8x128xf32> to vector<8x128xf32>
    %10 = vector.shape_cast %7 : vector<8x128xf32> to vector<1x1x8x128xf32>
    tpu.vector_store %arg5[%c0_7, %c0_8, %c0_9, %c0_10], %10 {strides = array<i32>} : memref<1x1x8x128xf32, #tpu.memory_space<vmem>>, vector<1x1x8x128xf32>,
    return
  }
  func.func @transform_0(%arg0: i32, %arg1: i32) -> (i32, i32, i32, i32) {
    %c0_i32 = arith.constant 0 : i32
    %c0_i32_0 = arith.constant 0 : i32
    %c0_i32_1 = arith.constant 0 : i32
    return %arg0, %arg1, %c0_i32, %c0_i32_0 : i32, i32, i32, i32
  }
  func.func @transform_1(%arg0: i32, %arg1: i32) -> (i32, i32) {
    %c0_i32 = arith.constant 0 : i32
    %c0_i32_0 = arith.constant 0 : i32
    %c0_i32_1 = arith.constant 0 : i32
    return %c0_i32, %c0_i32_0 : i32, i32
  }
  func.func @transform_2(%arg0: i32, %arg1: i32) -> (i32, i32) {
    %c0_i32 = arith.constant 0 : i32
    %c0_i32_0 = arith.constant 0 : i32
    %c0_i32_1 = arith.constant 0 : i32
    return %c0_i32, %c0_i32_0 : i32, i32
  }
  func.func @transform_3(%arg0: i32, %arg1: i32) -> (i32, i32, i32, i32) {
    %c0_i32 = arith.constant 0 : i32
    %c0_i32_0 = arith.constant 0 : i32
    %c0_i32_1 = arith.constant 0 : i32
    return %arg0, %arg1, %c0_i32, %c0_i32_0 : i32, i32, i32, i32
  }
}

</mosaic_0001>

<bundles_post_ra>
// kernel: squeeze.8
= control target key start
LH: loop header
LB: loop body
LE: loop exit
PB: predicated region body
PF: predicated region fallthrough
CT: control target
= control target key end

     0   :  { %vm15_vm0 = vcmask 64512   ;;  %s59_s0 = inlined_call_operand.vmem [shape: f32[1,3,4,8], index: 0, kind: input, shape index: {}]   ;;  %s60_s1 = inlined_call_operand.vmem [shape: f32[12,8], index: 1, kind: output, shape index: {}]  }
   0x1   :  { %v27_v0 = vld [vmem:[%s59_s0 + $0x8] sm:$0xf]  ;;  %v28_v1 = vld [vmem:[%s59_s0 + $0x4] sm:$0xf]  ;;  %v12_v2 = vld [vmem:[%s59_s0] sm:$0xf] }
   0x2   :  { %7 = vst [vmem:[#allocation0] sm:$0xf] %v27_v0 }
   0x3   :  { %11 = vst [vmem:[#allocation0 + $0x10] sm:$0xf] %v28_v1 }
   0x4   :  { %13 = vst [vmem:[#allocation0 + $0x8] sm:$0xf] %v12_v2 }
   0x9   :  { %v23_v3 = vld [vmem:[#allocation0] sm:$0xf]  }
   0xa   :  { %v18_v4 = vld [vmem:[#allocation0 + $0x10] sm:$0xf]   ;;  %30 = vst.msk [vmem:[%s60_s1 + $0x8] sm:$0xf] %vm15_vm0, %v23_v3  }
   0xb   :  { %v14_v5 = vld [vmem:[#allocation0 + $0x8] sm:$0xf]   ;;  %29 = vst.msk [vmem:[%s60_s1 + $0x4] sm:$0xf] %vm15_vm0, %v18_v4  }
   0xc   :  { %16 = vst.msk [vmem:[%s60_s1] sm:$0xf] %vm15_vm0, %v14_v5  }

// kernel: tile.23
= control target key start
LH: loop header
LB: loop body
LE: loop exit
PB: predicated region body
PF: predicated region fallthrough
CT: control target
= control target key end

     0   :  { %s28_s0 = inlined_call_operand.vmem [shape: f32[8], index: 0, kind: input, shape index: {}]   ;;  %s29_s1 = inlined_call_operand.vmem [shape: f32[16,8], index: 1, kind: output, shape index: {}]  }
   0x1   :  { %v4_v0 = vld [vmem:[%s28_s0] ss:$0 sm:$0xff] }
   0x2   :  { %5 = vst [vmem:[%s29_s1] sm:$0xff] %v4_v0 }
   0x3   :  { %8 = vst [vmem:[%s29_s1 + $0x8] sm:$0xff] %v4_v0 }

// kernel: tile.28
= control target key start
LH: loop header
LB: loop body
LE: loop exit
PB: predicated region body
PF: predicated region fallthrough
CT: control target
= control target key end

     0   :  { %s131_s10 = smov 120   ;;  %s132_s11 = smov 104   ;;  %vm3_vm0 = vcmask 64512   ;;  %vm9_vm1 = vcmask 1048512   ;;  %vm15_vm2 = vcmask 982912   ;;  %vm21_vm3 = vcmask 917312   ;;  %s207_s0 = inlined_call_operand.vmem [shape: f32[16,8], index: 0, kind: input, shape index: {}]   ;;  %s208_s1 = inlined_call_operand.vmem [shape: f32[1,128], index: 1, kind: output, shape index: {}]  }
   0x1   :  { %v101_v0 = vld [vmem:[%s207_s0 + $0xf] sm:$0x1]   ;;  %v103_v1 = vld [vmem:[%s207_s0 + $0xd] sm:$0x1]   ;;  %v105_v2 = vld [vmem:[%s207_s0 + $0xb] sm:$0x1]  }
   0x2   :  { %7 = vrot.lane.b32.xlu0 %v101_v0, %s131_s10  ;;  %19 = vrot.lane.b32.xlu1 %v103_v1, %s132_s11  ;;  %s133_s14 = smov 88   ;;  %v102_v3 = vld [vmem:[%s207_s0 + $0xe] sm:$0x1]   ;;  %v104_v4 = vld [vmem:[%s207_s0 + $0xc] sm:$0x1]   ;;  %s134_s19 = smov 112  }
   0x3   :  { %31 = vrot.lane.b32.xlu2 %v105_v2, %s133_s14  ;;  %s135_s20 = smov 96   ;;  %v106_v5 = vld [vmem:[%s207_s0 + $0xa] sm:$0x1]   ;;  %s136_s23 = smov 80   ;;  %v107_v6 = vld [vmem:[%s207_s0 + $0x9] sm:$0x1]  }
   0x4   :  { %v108_v7 = vld [vmem:[%s207_s0 + $0x8] sm:$0x1]   ;;  %s137_s28 = smov 72   ;;  %s138_s29 = smov 64   ;;  %v109_v8 = vld [vmem:[%s207_s0 + $0x7] sm:$0x1]  }
   0x5   :  { %s139_s3 = smov 56   ;;  %v110_v9 = vld [vmem:[%s207_s0 + $0x6] sm:$0x1]   ;;  %v111_v10 = vld [vmem:[%s207_s0 + $0x5] sm:$0x1]   ;;  %s140_s8 = smov 48  }
   0x6   :  { %s141_s9 = smov 40   ;;  %v112_v11 = vld [vmem:[%s207_s0 + $0x4] sm:$0x1]   ;;  %s142_s12 = smov 32   ;;  %v113_v12 = vld [vmem:[%s207_s0 + $0x3] sm:$0x1]  }
   0x7   :  { %v114_v13 = vld [vmem:[%s207_s0 + $0x2] sm:$0x1]   ;;  %s143_s17 = smov 24   ;;  %s144_s18 = smov 16   ;;  %v115_v14 = vld [vmem:[%s207_s0 + $0x1] sm:$0x1]  }
   0x8   :  { %s145_s21 = smov 8   ;;  %v2_v15 = vld [vmem:[%s207_s0] sm:$0x1]   ;;  %vm27_vm4 = vcmask 851712   ;;  %vm33_vm5 = vcmask 786112   ;;  %vm39_vm6 = vcmask 720512  }
   0x9   :  { %4 = vst.msk [vmem:[#allocation0] sm:$0x1] %vm3_vm0, %v2_v15   ;;  %vm45_vm7 = vcmask 654912   ;;  %vm51_vm8 = vcmask 589312   ;;  %vm57_vm9 = vcmask 523712   ;;  %vm63_vm10 = vcmask 458112  }
   0xa   :  { %13 = vrot.lane.b32.xlu0 %v102_v3, %s134_s19  ;;  %25 = vrot.lane.b32.xlu1 %v104_v4, %s135_s20  ;;  %vm69_vm11 = vcmask 392512   ;;  %vm75_vm12 = vcmask 326912   ;;  %vm81_vm13 = vcmask 261312   ;;  %vm87_vm14 = vcmask 195712  }
   0xb   :  { %37 = vrot.lane.b32.xlu2 %v106_v5, %s136_s23  ;;  %vm93_vm15 = vcmask 130112  }
  0x12   :  { %43 = vrot.lane.b32.xlu0 %v107_v6, %s137_s28  ;;  %49 = vrot.lane.b32.xlu1 %v108_v7, %s138_s29 }
  0x13   :  { %55 = vrot.lane.b32.xlu2 %v109_v8, %s139_s3 }
  0x1a   :  { %61 = vrot.lane.b32.xlu0 %v110_v9, %s140_s8  ;;  %67 = vrot.lane.b32.xlu1 %v111_v10, %s141_s9 }
  0x1b   :  { %73 = vrot.lane.b32.xlu2 %v112_v11, %s142_s12 }
  0x22   :  { %79 = vrot.lane.b32.xlu0 %v113_v12, %s143_s17  ;;  %85 = vrot.lane.b32.xlu1 %v114_v13, %s144_s18 }
  0x23   :  { %91 = vrot.lane.b32.xlu2 %v115_v14, %s145_s21 }
  0x5d   :  { %v32_v16 = vpop.permute.xlu2 %31  }
  0x65   :  { %v38_v17 = vpop.permute.xlu2 %37  }
  0x6d   :  { %v56_v18 = vpop.permute.xlu2 %55  }
  0x74   :  { %v8_v19 = vpop.permute.xlu0 %7   ;;  %v20_v20 = vpop.permute.xlu1 %19  }
  0x75   :  { %10 = vst.msk [vmem:[#allocation0] sm:$0x1] %vm9_vm1, %v8_v19   ;;  %v74_v21 = vpop.permute.xlu2 %73  }
  0x7c   :  { %v14_v22 = vpop.permute.xlu0 %13   ;;  %v26_v23 = vpop.permute.xlu1 %25  }
  0x7d   :  { %16 = vst.msk [vmem:[#allocation0] sm:$0x1] %vm15_vm2, %v14_v22   ;;  %v92_v24 = vpop.permute.xlu2 %91  }
  0x7e   :  { %22 = vst.msk [vmem:[#allocation0] sm:$0x1] %vm21_vm3, %v20_v20  }
  0x7f   :  { %28 = vst.msk [vmem:[#allocation0] sm:$0x1] %vm27_vm4, %v26_v23  }
  0x80   :  { %34 = vst.msk [vmem:[#allocation0] sm:$0x1] %vm33_vm5, %v32_v16  }
  0x81   :  { %40 = vst.msk [vmem:[#allocation0] sm:$0x1] %vm39_vm6, %v38_v17  }
  0x84   :  { %v44_v25 = vpop.permute.xlu0 %43   ;;  %v50_v26 = vpop.permute.xlu1 %49  }
  0x85   :  { %46 = vst.msk [vmem:[#allocation0] sm:$0x1] %vm45_vm7, %v44_v25  }
  0x86   :  { %52 = vst.msk [vmem:[#allocation0] sm:$0x1] %vm51_vm8, %v50_v26  }
  0x87   :  { %58 = vst.msk [vmem:[#allocation0] sm:$0x1] %vm57_vm9, %v56_v18  }
  0x8c   :  { %v62_v27 = vpop.permute.xlu0 %61   ;;  %v68_v28 = vpop.permute.xlu1 %67  }
  0x8d   :  { %64 = vst.msk [vmem:[#allocation0] sm:$0x1] %vm63_vm10, %v62_v27  }
  0x8e   :  { %70 = vst.msk [vmem:[#allocation0] sm:$0x1] %vm69_vm11, %v68_v28  }
  0x8f   :  { %76 = vst.msk [vmem:[#allocation0] sm:$0x1] %vm75_vm12, %v74_v21  }
  0x94   :  { %v80_v29 = vpop.permute.xlu0 %79   ;;  %v86_v30 = vpop.permute.xlu1 %85  }
  0x95   :  { %82 = vst.msk [vmem:[#allocation0] sm:$0x1] %vm81_vm13, %v80_v29  }
  0x96   :  { %88 = vst.msk [vmem:[#allocation0] sm:$0x1] %vm87_vm14, %v86_v30  }
  0x97   :  { %94 = vst.msk [vmem:[#allocation0] sm:$0x1] %vm93_vm15, %v92_v24  }
  0x9e   :  { %v97_v31 = vld [vmem:[#allocation0] sm:$0x1] }
  0x9f   :  { %100 = vst [vmem:[%s208_s1] sm:$0x1] %v97_v31 }

// kernel: mask_conv2d.3
= control target key start
LH: loop header
LB: loop body
LE: loop exit
PB: predicated region body
PF: predicated region fallthrough
CT: control target
= control target key end

     0   :  { %s413_s12 = smov 0   ;;  %s415_s13 = smov 0   ;;  %s464_s0 = inlined_call_operand.vmem [shape: f32[2,2,8,128], index: 0, kind: input, shape index: {}]   ;;  %s465_s1 = inlined_call_operand.vmem [shape: f32[1,128], index: 1, kind: input, shape index: {}]   ;;  %s466_s2 = inlined_call_operand.vmem [shape: f32[1,128], index: 2, kind: input, shape index: {}]   ;;  %s467_s3 = inlined_call_operand.vmem [shape: f32[2,2,8,128], index: 3, kind: output, shape index: {}]  }
   0x1   :  { %s417_s14 = smov 0   ;;  %s419_s15 = smov 0  }
   0x2   :  { %s421_s16 = smov 0  }
   0x3 LB: > { %s22_s17 = sadd.s32 1, %s383_s14  ;;  %s25_s18 = sadd.s32 1, %s387_s15  ;;  %s391_s16 = sphi %s421_s16, %s13_s16   ;;  %s387_s15 = sphi %s419_s15, %s471_s15   ;;  %s383_s14 = sphi %s417_s14, %s470_s14   ;;  %s379_s13 = sphi %s415_s13, %s469_s13   ;;  %s375_s12 = sphi %s413_s12, %s468_s12  }
   0x4   : > { %p23_p0 = scmp.ge.s32.totalorder %s22_s17, 2  ;;  %p304_p1 = scmp.ge.s32.totalorder %s391_s16, 1 }
   0x5   : > { %p156_p2 = scmp.lt.s32.totalorder %s391_s16, 5 }
   0x6   : > { %s473_s17 = smov (%p23_p0, %s22_s17), 0  ;;  %s475_s18 = smov (!%p23_p0, %s25_s18), %s387_s15 }
   0x7   : > { %p157_p3 = pnand %p304_p1, %p156_p2  ;;  %p27_p4 = scmp.ge.s32.totalorder %s475_s18, 2 }
   0x8   : > { %p186_p5 = scmp.lt.s32.totalorder (!%p157_p3), %s379_s13, 1  ;;  %p188_p6 = scmp.lt.s32.totalorder (!%p157_p3), %s375_s12, 1 }
   0x9   : > { %s477_s18 = smov (%p27_p4, %s475_s18), 0  ;;  %160 = sbr.rel (%p157_p3) target bundleno = 25 (0x19), region = 32 }
   0xe   : > { %s479_s13 = smov (!%p186_p5, %s379_s13), 1  ;;  %s481_s12 = smov (!%p188_p6, %s375_s12), 1  ;;  %v351_v0 = vld [vmem:[%s465_s1] ss:$0 sm:$0xff] }
   0xf   : > { %s305_s19 = sshll.u32 %s479_s13, 1  ;;  %v352_v1 = vld [vmem:[%s466_s2] ss:$0 sm:$0xff] }
  0x10   : > { %s191_s20 = sadd.s32 %s305_s19, %s481_s12 }
  0x11   : > { %s306_s23 = sshll.u32 %s191_s20, 3 }
  0x12   : > { %s193_s26 = scalar_lea.vmem %s464_s0, %s306_s23  ;;  %s201_s4 = scalar_lea.vmem %s467_s3, %s306_s23 }
  0x13   : > { %v202_v2 = vld [vmem:[%s193_s26] sm:$0xff] }
  0x14   : > { %v207_v3 = vmul.f32 %v351_v0, %v202_v2 }
  0x16   : > { %v212_v4 = vadd.f32 %v352_v1, %v207_v3 }
  0x18   : > { %213 = vst [vmem:[%s201_s4] sm:$0xff] %v212_v4 }
  0x19 PF: > { %s13_s16 = sadd.s32 1, %s391_s16   ;;  %s468_s12 = smov %s383_s14 }
  0x1a   : > { %p10_p7 = scmp.ge.s32.totalorder %s13_s16, 6   ;;  %s469_s13 = smov %s387_s15 }
  0x1b   : > { %s470_s14 = smov %s473_s17  ;;  %s471_s15 = smov %s477_s18 }
  0x1c   :  { %12 = sbr.rel (!%p10_p7) target bundleno = 3 (0x3), region = 62 }

// kernel: mask_conv2d.2
= control target key start
LH: loop header
LB: loop body
LE: loop exit
PB: predicated region body
PF: predicated region fallthrough
CT: control target
= control target key end

     0   :  { %s790_s15 = smov 0   ;;  %s792_s16 = smov 0   ;;  %s1024_s0 = inlined_call_operand.vmem [shape: f32[2,2,10,72], index: 0, kind: input, shape index: {}]   ;;  %s1025_s1 = inlined_call_operand.vmem [shape: f32[3,72,256], index: 1, kind: input, shape index: {}]   ;;  %s1026_s2 = inlined_call_operand.vmem [shape: f32[2,128], index: 2, kind: input, shape index: {}]   ;;  %s1027_s3 = inlined_call_operand.vmem [shape: f32[2,2,8,128], index: 3, kind: output, shape index: {0}]   ;;  %s1028_s4 = inlined_call_operand.vmem [shape: f32[2,2,2,128], index: 4, kind: output, shape index: {1}]  }
   0x1   :  { %s794_s17 = smov 0   ;;  %s796_s18 = smov 0  }
   0x2   :  { %s798_s19 = smov 0  }
   0x3 LB: > { %s24_s20 = sadd.s32 1, %s755_s17  ;;  %s27_s21 = sadd.s32 1, %s759_s18  ;;  %s763_s19 = sphi %s798_s19, %s15_s19   ;;  %s759_s18 = sphi %s796_s18, %s1032_s18   ;;  %s755_s17 = sphi %s794_s17, %s1031_s17   ;;  %s751_s16 = sphi %s792_s16, %s1030_s16   ;;  %s747_s15 = sphi %s790_s15, %s1029_s15  }
   0x4   : > { %p25_p0 = scmp.ge.s32.totalorder %s24_s20, 2  ;;  %p628_p1 = scmp.ge.s32.totalorder %s763_s19, 1 }
   0x5   : > { %p187_p2 = scmp.lt.s32.totalorder %s763_s19, 5 }
   0x6   : > { %s1034_s20 = smov (%p25_p0, %s24_s20), 0  ;;  %s1036_s21 = smov (!%p25_p0, %s27_s21), %s759_s18 }
   0x7   : > { %p188_p3 = pnand %p628_p1, %p187_p2  ;;  %p29_p4 = scmp.ge.s32.totalorder %s1036_s21, 2 }
   0x8   : > { %p228_p5 = scmp.lt.s32.totalorder (!%p188_p3), %s751_s16, 1  ;;  %p230_p6 = scmp.lt.s32.totalorder (!%p188_p3), %s747_s15, 1 }
   0x9   : > { %s1038_s21 = smov (%p29_p4, %s1036_s21), 0  ;;  %191 = sbr.rel (%p188_p3) target bundleno = 225 (0xe1), region = 32 }
   0xe   : > { %v653_v0 = vld [vmem:[%s1025_s1 + $0x118] sm:$0xff]  ;;  %v651_v1 = vld [vmem:[%s1025_s1 + $0x108] sm:$0xff]  ;;  %s1040_s16 = smov (!%p228_p5, %s751_s16), 1  ;;  %s1042_s15 = smov (!%p230_p6, %s747_s15), 1  ;;  %v652_v8 = vld [vmem:[%s1025_s1 + $0x110] sm:$0xff]  ;;  %vm292_vm0 = vcmask 588800  }
   0xf   : > { %v271_v2 = vld [vmem:[%s1025_s1 + $0x88] sm:$0xff]  ;;  %323 = vmatpush.msra.mxu1 %v653_v0  ;;  %v269_v3 = vld [vmem:[%s1025_s1 + $0x78] sm:$0xff]  ;;  %s630_s12 = sshll.u32 %s1040_s16, 2  ;;  %s632_s13 = sshll.u32 %s1040_s16, 1  ;;  %303 = vmatpush.msra.mxu0 %v652_v8  ;;  %v650_v11 = vld [vmem:[%s1025_s1 + $0x100] sm:$0xff] }
  0x10   : > { %366 = vmatpush.msra.mxu3 %v271_v2  ;;  %v649_v4 = vld [vmem:[%s1025_s1 + $0xf8] sm:$0xff]  ;;  %v267_v5 = vld [vmem:[%s1025_s1 + $0x68] sm:$0xff]  ;;  %s629_s23 = sshll.u32 %s1042_s15, 1  ;;  %s847_s24 = sadd.s32 %s632_s13, %s1042_s15  ;;  %v648_v12 = vld [vmem:[%s1025_s1 + $0xf0] sm:$0xff] }
  0x11   : > { %324 = vmatpush.msra.mxu1 %v651_v1  ;;  %v647_v6 = vld [vmem:[%s1025_s1 + $0xe8] sm:$0xff]  ;;  %v265_v7 = vld [vmem:[%s1025_s1 + $0x58] sm:$0xff]  ;;  %s234_s30 = sadd.s32 %s630_s12, %s629_s23  ;;  %304 = vmatpush.msra.mxu0 %v650_v11  ;;  %v646_v15 = vld [vmem:[%s1025_s1 + $0xe0] sm:$0xff]  ;;  %s635_s28 = sshll.u32 %s847_s24, 1 }
  0x12   : > { %367 = vmatpush.msra.mxu3 %v269_v3  ;;  %v645_v9 = vld [vmem:[%s1025_s1 + $0xd8] sm:$0xff]  ;;  %v263_v10 = vld [vmem:[%s1025_s1 + $0x48] sm:$0xff]  ;;  %s631_s10 = sshll.u32 %s234_s30, 3  ;;  %v270_v18 = vld [vmem:[%s1025_s1 + $0x80] sm:$0xff]  ;;  %s252_s30 = scalar_lea.vmem %s1028_s4, %s635_s28 }
  0x13   : > { %325 = vmatpush.msra.mxu1 %v649_v4  ;;  %v643_v13 = vld [vmem:[%s1025_s1 + $0xc8] sm:$0xff]  ;;  %v261_v14 = vld [vmem:[%s1025_s1 + $0x38] sm:$0xff]  ;;  %305 = vmatpush.msra.mxu0 %v648_v12  ;;  %v644_v19 = vld [vmem:[%s1025_s1 + $0xd0] sm:$0xff]  ;;  %s894_s9 = scalar_lea.vmem %s1024_s0, %s631_s10  ;;  %s633_s10 = sshll.u32 %s847_s24, 3 }
  0x14   : > { %368 = vmatpush.msra.mxu3 %v267_v5  ;;  %v641_v16 = vld [vmem:[%s1025_s1 + $0xb8] sm:$0xff]  ;;  %v259_v17 = vld [vmem:[%s1025_s1 + $0x28] sm:$0xff]  ;;  %v268_v20 = vld [vmem:[%s1025_s1 + $0x70] sm:$0xff]  ;;  %346 = vmatpush.msra.mxu2 %v270_v18  ;;  %s244_s27 = scalar_lea.vmem %s1027_s3, %s633_s10 }
  0x15   : > { %326 = vmatpush.msra.mxu1 %v647_v6  ;;  %v639_v21 = vld [vmem:[%s1025_s1 + $0xa8] sm:$0xff]  ;;  %v257_v22 = vld [vmem:[%s1025_s1 + $0x18] sm:$0xff]  ;;  %306 = vmatpush.msra.mxu0 %v646_v15  ;;  %v642_v23 = vld [vmem:[%s1025_s1 + $0xc0] sm:$0xff] }
  0x16   : > { %369 = vmatpush.msra.mxu3 %v265_v7  ;;  %v266_v24 = vld [vmem:[%s1025_s1 + $0x60] sm:$0xff]  ;;  %v637_v25 = vld [vmem:[%s1025_s1 + $0x98] sm:$0xff]  ;;  %v255_v26 = vld [vmem:[%s1025_s1 + $0x8] sm:$0xff]  ;;  %347 = vmatpush.msra.mxu2 %v268_v20 }
  0x17   : > { %327 = vmatpush.msra.mxu1 %v645_v9  ;;  %307 = vmatpush.msra.mxu0 %v644_v19  ;;  %v675_v27 = vld [vmem:[%s1025_s1 + $0x1a8] sm:$0xff]  ;;  %v253_v28 = vld [vmem:[%s894_s9] sm:$0xff]  ;;  %v640_v30 = vld [vmem:[%s1025_s1 + $0xb0] sm:$0xff] }
  0x18   : > { %370 = vmatpush.msra.mxu3 %v263_v10  ;;  %v272_v29 = vld [vmem:[%s894_s9 + $0x1] sm:$0xff]  ;;  %348 = vmatpush.msra.mxu2 %v266_v24  ;;  %v673_v31 = vld [vmem:[%s1025_s1 + $0x198] sm:$0xff]  ;;  %v264_v32 = vld [vmem:[%s1025_s1 + $0x50] sm:$0xff] }
  0x19   : > { %328 = vmatpush.msra.mxu1 %v643_v13  ;;  %308 = vmatpush.msra.mxu0 %v642_v23  ;;  %v638_v33 = vld [vmem:[%s1025_s1 + $0xa0] sm:$0xff]  ;;  %v671_v34 = vld [vmem:[%s1025_s1 + $0x188] sm:$0xff]  ;;  %v636_v36 = vld [vmem:[%s1025_s1 + $0x90] sm:$0xff] }
  0x1a   : > { %371 = vmatpush.msra.mxu3 %v261_v14  ;;  %v262_v35 = vld [vmem:[%s1025_s1 + $0x40] sm:$0xff]  ;;  %349 = vmatpush.msra.mxu2 %v264_v32  ;;  %v669_v37 = vld [vmem:[%s1025_s1 + $0x178] sm:$0xff]  ;;  %v260_v39 = vld [vmem:[%s1025_s1 + $0x30] sm:$0xff] }
  0x1b   : > { %329 = vmatpush.msra.mxu1 %v641_v16  ;;  %309 = vmatpush.msra.mxu0 %v640_v30  ;;  %v674_v38 = vld [vmem:[%s1025_s1 + $0x1a0] sm:$0xff]  ;;  %v667_v40 = vld [vmem:[%s1025_s1 + $0x168] sm:$0xff]  ;;  %v672_v41 = vld [vmem:[%s1025_s1 + $0x190] sm:$0xff] }
  0x1c   : > { %372 = vmatpush.msra.mxu3 %v259_v17  ;;  %350 = vmatpush.msra.mxu2 %v262_v35  ;;  %v258_v42 = vld [vmem:[%s1025_s1 + $0x20] sm:$0xff]  ;;  %v665_v43 = vld [vmem:[%s1025_s1 + $0x158] sm:$0xff]  ;;  %v256_v45 = vld [vmem:[%s1025_s1 + $0x10] sm:$0xff] }
  0x1d   : > { %330 = vmatpush.msra.mxu1 %v639_v21  ;;  %310 = vmatpush.msra.mxu0 %v638_v33  ;;  %v670_v44 = vld [vmem:[%s1025_s1 + $0x180] sm:$0xff]  ;;  %v663_v46 = vld [vmem:[%s1025_s1 + $0x148] sm:$0xff]  ;;  %v668_v47 = vld [vmem:[%s1025_s1 + $0x170] sm:$0xff] }
  0x1e   : > { %373 = vmatpush.msra.mxu3 %v257_v22  ;;  %351 = vmatpush.msra.mxu2 %v260_v39  ;;  %v254_v48 = vld [vmem:[%s1025_s1] sm:$0xff]  ;;  %v661_v49 = vld [vmem:[%s1025_s1 + $0x138] sm:$0xff]  ;;  %v659_v51 = vld [vmem:[%s1025_s1 + $0x128] sm:$0xff] }
  0x1f   : > { %331 = vmatpush.msra.mxu1 %v637_v25  ;;  %311 = vmatpush.msra.mxu0 %v636_v36  ;;  %v666_v50 = vld [vmem:[%s1025_s1 + $0x160] sm:$0xff]  ;;  %v664_v52 = vld [vmem:[%s1025_s1 + $0x150] sm:$0xff] }
  0x20   : > { %374 = vmatpush.msra.mxu3 %v255_v26  ;;  %655 = vmatmul.msk.f32.vlgmr.msra.gmra.mxu1 %vm292_vm0, %v272_v29  ;;  %v379_v53 = vld [vmem:[%s894_s9 + $0x2] sm:$0xff]  ;;  %v660_v55 = vld [vmem:[%s1025_s1 + $0x130] sm:$0xff]  ;;  %v444_v59 = vld [vmem:[%s1026_s2] sm:$0x3] }
  0x21   : > { %429 = vmatpush.msrb.mxu1 %v675_v27  ;;  %657 = vmatmul.msk.f32.vlgmr.msra.gmra.mxu3 %vm292_vm0, %v253_v28  ;;  %v662_v54 = vld [vmem:[%s1025_s1 + $0x140] sm:$0xff]  ;;  %v447_v61 = vperm.slane %v444_v59, 1  ;;  %v445_v9 = vperm.slane %v444_v59, 0 }
  0x22   : > { %409 = vmatpush.msrb.mxu0 %v674_v38  ;;  %352 = vmatpush.msra.mxu2 %v258_v42  ;;  %v658_v56 = vld [vmem:[%s1025_s1 + $0x120] sm:$0xff] }
  0x23   : > { %430 = vmatpush.msrb.mxu1 %v673_v31  ;;  %654 = vmatmul.msk.f32.vlgmr.msra.gmra.mxu0 %vm292_vm0, %v272_v29 }
  0x24   : > { %410 = vmatpush.msrb.mxu0 %v672_v41  ;;  %353 = vmatpush.msra.mxu2 %v256_v45 }
  0x25   : > { %431 = vmatpush.msrb.mxu1 %v671_v34 }
  0x26   : > { %411 = vmatpush.msrb.mxu0 %v670_v44  ;;  %354 = vmatpush.msra.mxu2 %v254_v48 }
  0x27   : > { %432 = vmatpush.msrb.mxu1 %v669_v37  ;;  %656 = vmatmul.msk.f32.vlgmr.msra.gmra.mxu2 %vm292_vm0, %v253_v28 }
  0x28   : > { %412 = vmatpush.msrb.mxu0 %v668_v47 }
  0x29   : > { %433 = vmatpush.msrb.mxu1 %v667_v40 }
  0x2a   : > { %413 = vmatpush.msrb.mxu0 %v666_v50 }
  0x2b   : > { %434 = vmatpush.msrb.mxu1 %v665_v43 }
  0x2c   : > { %414 = vmatpush.msrb.mxu0 %v664_v52 }
  0x2d   : > { %435 = vmatpush.msrb.mxu1 %v663_v46 }
  0x2e   : > { %415 = vmatpush.msrb.mxu0 %v662_v54 }
  0x2f   : > { %436 = vmatpush.msrb.mxu1 %v661_v49 }
  0x30   : > { %416 = vmatpush.msrb.mxu0 %v660_v55 }
  0x31   : > { %437 = vmatpush.msrb.mxu1 %v659_v51 }
  0x32   : > { %677 = vmatmul.msk.f32.vlgmr.msrb.gmra.mxu1 %vm292_vm0, %v379_v53  ;;  %417 = vmatpush.msrb.mxu0 %v658_v56 }
  0x33   : > { %676 = vmatmul.msk.f32.vlgmr.msrb.gmra.mxu0 %vm292_vm0, %v379_v53 }
  0x9d   : > { %v333_v57 = vpop.f32.mrf.mxu1 }
  0xa0   : > { %v313_v2 = vpop.f32.mrf.mxu0 }
  0xa4   : > { %v376_v58 = vpop.f32.mrf.mxu3 }
  0xa5   : > { %v377_v60 = vadd.f32 %v376_v58, %v333_v57 }
  0xaa   : > { %v356_v4 = vpop.f32.mrf.mxu2 }
  0xab   : > { %v357_v6 = vadd.f32 %v356_v4, %v313_v2 }
  0xaf   : > { %v439_v62 = vpop.f32.mrf.mxu1 }
  0xb0   : > { %v443_v63 = vadd.f32 %v439_v62, %v377_v60  ;;  %v419_v7 = vpop.f32.mrf.mxu0 }
  0xb1   : > { %v442_v8 = vadd.f32 %v419_v7, %v357_v6 }
  0xb2   : > { %v448_v0 = vadd.f32 %v447_v61, %v443_v63 }
  0xb3   : > { %v446_v12 = vadd.f32 %v445_v9, %v442_v8 }
  0xb4   : > { %v678_v1 = vmul.f32 -1.442695, %v448_v0 }
  0xb5   : > { %v450_v17 = vmul.f32 0.2, %v446_v12  ;;  %vm449_vm2 = vcmp.ge.f32.partialorder %v446_v12, 0.0 }
  0xb6   : > { %721 = vpow2.f32 %v678_v1 }
  0xb7   : > { %v451_v21 = vsel %vm449_vm2, %v446_v12, %v450_v17 }
  0xbc   : > { %v722_v3 = vpop.eup %721 }
  0xbd   : > { %v455_v5 = vadd.f32 1.0, %v722_v3 }
  0xbf   : > { %723 = vrcp.f32 %v455_v5  ;;  %v467_v14 = vand.u32 2147483648, %v455_v5  ;;  %v465_v16 = vand.u32 2147483647, %v455_v5  ;;  %vm461_vm3 = vweird.f32 %v455_v5 }
  0xc1   : > { %v468_v19 = vor.u32 1.1754944e-38, %v467_v14  ;;  %vm466_vm5 = vcmp.eq.f32.partialorder %v465_v16, 8.507059e+37 }
  0xc5   : > { %v724_v10 = vpop.eup %723 }
  0xc6   : > { %v457_v11 = vmul.f32 %v724_v10, %v455_v5  ;;  %vm462_vm1 = vweird.f32 %v724_v10 }
  0xc7   : > { %vm463_vm4 = vmor %vm461_vm3, %vm462_vm1 }
  0xc8   : > { %v458_v13 = vsub.f32 1.0, %v457_v11 }
  0xca   : > { %v459_v15 = vmul.f32 %v724_v10, %v458_v13 }
  0xcc   : > { %v460_v18 = vadd.f32 %v724_v10, %v459_v15 }
  0xce   : > { %v464_v20 = vsel %vm463_vm4, %v724_v10, %v460_v18 }
  0xcf   : > { %v469_v22 = vsel %vm466_vm5, %v468_v19, %v464_v20 }
  0xd0   : > { %v471_v23 = vmul.f32 %v469_v22, %v451_v21 }
  0xd2   : > { %472 = vst [vmem:[%s244_s27] sm:$0xff] %v471_v23  ;;  %v473_v24 = vrot.slane %v471_v23, 4  ;;  %v480_v25 = vmul.f32 %v471_v23, %v471_v23 }
  0xd4   : > { %v474_v26 = vadd.f32 %v473_v24, %v471_v23  ;;  %v481_v27 = vrot.slane %v480_v25, 4 }
  0xd6   : > { %v475_v28 = vrot.slane %v474_v26, 2  ;;  %v482_v29 = vadd.f32 %v481_v27, %v480_v25 }
  0xd8   : > { %v476_v30 = vadd.f32 %v475_v28, %v474_v26  ;;  %v483_v31 = vrot.slane %v482_v29, 2 }
  0xda   : > { %v477_v32 = vrot.slane %v476_v30, 1  ;;  %v484_v33 = vadd.f32 %v483_v31, %v482_v29 }
  0xdc   : > { %v478_v34 = vadd.f32 %v477_v32, %v476_v30  ;;  %v485_v35 = vrot.slane %v484_v33, 1 }
  0xde   : > { %479 = vst [vmem:[%s252_s30] sm:$0x1] %v478_v34  ;;  %v486_v36 = vadd.f32 %v485_v35, %v484_v33 }
  0xe0   : > { %487 = vst [vmem:[%s252_s30 + $0x1] sm:$0x1] %v486_v36 }
  0xe1 PF: > { %s15_s19 = sadd.s32 1, %s763_s19   ;;  %s1029_s15 = smov %s755_s17 }
  0xe2   : > { %p12_p7 = scmp.ge.s32.totalorder %s15_s19, 6   ;;  %s1030_s16 = smov %s759_s18 }
  0xe3   : > { %s1031_s17 = smov %s1034_s20  ;;  %s1032_s18 = smov %s1038_s21 }
  0xe4   :  { %14 = sbr.rel (!%p12_p7) target bundleno = 3 (0x3), region = 76 }

</bundles_post_ra>
